<compile_context>
chip_gen: v7x
topology: tpu7x:2x2x1
jax: 0.10.0
libtpu: 0.0.40
codegen_flags: <defaults>
</compile_context>

<pallas_src>
import functools

import jax
import jax.numpy as jnp
from jax.experimental import pallas as pl
from jax.experimental.pallas import tpu as pltpu


def _glstm_kernel(x_ref, h_ref, c_ref, nw_ref, fw_ref, b_ref,
                  h_out_ref, c_out_ref, *, tm, num_feats, compute_dtype):
    F = num_feats

    # z = x + h on the full (N, F) state; x/h blocks are grid-invariant -> resident.
    z = (x_ref[...] + h_ref[...]).astype(compute_dtype)

    # Node-side mixing for all 4 gates in ONE MXU call: (4*TM, N) @ (N, F) -> (4*TM, F).
    y = jnp.dot(nw_ref[...], z, preferred_element_type=jnp.float32)

    # Relayout gate blocks from sublanes to lanes: (4*TM, F) -> (TM, 4*F).
    p = jnp.concatenate([y[g * tm:(g + 1) * tm, :] for g in range(4)], axis=1)

    # Feature-side mixing for all 4 gates in ONE MXU call against the block-diagonal
    # feature weights: (TM, 4F) @ (4F, 4F) -> lane-dense (TM, 4F) gate slab.
    g_pre = jnp.dot(p.astype(compute_dtype), fw_ref[...],
                    preferred_element_type=jnp.float32) + b_ref[...]

    # Activations on the lane-dense slab, then split per gate.
    sig = jax.nn.sigmoid(g_pre)
    f_g = sig[:, 0 * F:1 * F]          # forget
    i_g = sig[:, 1 * F:2 * F]          # input
    o_g = sig[:, 2 * F:3 * F]          # output
    g_g = jnp.tanh(g_pre[:, 3 * F:4 * F])   # cell candidate (Tanh)

    c_new = f_g * c_ref[...] + i_g * g_g
    h_new = o_g * c_new                # GLSTM spec: h = output * c (no tanh(c))

    c_out_ref[...] = c_new.astype(c_out_ref.dtype)
    h_out_ref[...] = h_new.astype(h_out_ref.dtype)


def glstm_forward(inputs, hist, carousel, node_w, feats_w, bias,
                  *, row_tile=None, compute_dtype=jnp.bfloat16):
    """GLSTM cell forward pass.

    inputs, hist, carousel : (N, F) float32
    node_w  : (4, N, N)  stacked node weights   [forget, input, output, cell]
    feats_w : (4, F, F)  stacked feature weights
    bias    : (4, N, F)  stacked biases
    returns (h, c), each (N, F) float32
    """
    N, F = inputs.shape
    assert node_w.shape == (4, N, N)
    assert feats_w.shape == (4, F, F)
    assert bias.shape == (4, N, F)

    # ---- node-row tile size ----
    if row_tile is None:
        row_tile = min(N, 128)
    tm = row_tile
    assert N % tm == 0 and tm % 8 == 0, "row_tile must divide N and be a multiple of 8"
    n_tiles = N // tm

    w_dtype = compute_dtype
    f_dtype = inputs.dtype

    # ---- one-time wrapper-side weight packing (zero in-kernel cost) ----
    # node weights: (4, N, N) -> (n_tiles, 4*tm, N); tile i, rows [g*tm:(g+1)*tm] are
    # the rows of N_w[g] producing output nodes [i*tm, (i+1)*tm).
    nw_packed = (node_w.reshape(4, n_tiles, tm, N)
                 .transpose(1, 0, 2, 3)
                 .reshape(n_tiles, 4 * tm, N)
                 .astype(w_dtype))
    # feature weights: block-diagonal (4F, 4F), F_w[g] on diagonal block g.
    fw_bd = jnp.zeros((4 * F, 4 * F), feats_w.dtype)
    for g in range(4):
        fw_bd = fw_bd.at[g * F:(g + 1) * F, g * F:(g + 1) * F].set(feats_w[g])
    fw_bd = fw_bd.astype(w_dtype)
    # bias: (4, N, F) -> lane-dense (N, 4F); column block g = bias[g].
    bias_packed = bias.transpose(1, 0, 2).reshape(N, 4 * F).astype(jnp.float32)

    # ---- VMEM budget: resident arrays + double-buffered per-tile blocks ----
    wb = jnp.dtype(w_dtype).itemsize
    fb = jnp.dtype(f_dtype).itemsize
    resident = 2 * N * F * fb + (4 * F) * (4 * F) * wb          # x, h, fw_bd
    per_tile = (4 * tm * N * wb      # node_w tile
                + tm * 4 * F * 4     # bias tile
                + tm * F * fb        # carousel tile
                + 2 * tm * F * fb)   # h/c output tiles
    vmem_bytes = 2 * (resident + 2 * per_tile) + (8 << 20)      # headroom for intermediates
    vmem_bytes = int(max(vmem_bytes, 16 << 20))
    vmem_bytes = int(min(vmem_bytes, 64 << 20))                 # v7x physical VMEM ceiling

    full_state_spec = pl.BlockSpec((N, F), lambda i: (0, 0))    # resident across tiles

    kernel = functools.partial(_glstm_kernel, tm=tm, num_feats=F, compute_dtype=w_dtype)

    h_out, c_out = pl.pallas_call(
        kernel,
        grid=(n_tiles,),
        in_specs=[
            full_state_spec,                                      # inputs (full, resident)
            full_state_spec,                                      # hist   (full, resident)
            pl.BlockSpec((tm, F), lambda i: (i, 0)),              # carousel row tile
            pl.BlockSpec((None, 4 * tm, N), lambda i: (i, 0, 0)), # packed node_w tile
            pl.BlockSpec((4 * F, 4 * F), lambda i: (0, 0)),       # block-diag feats_w (resident)
            pl.BlockSpec((tm, 4 * F), lambda i: (i, 0)),          # packed bias row tile
        ],
        out_specs=(
            pl.BlockSpec((tm, F), lambda i: (i, 0)),              # h
            pl.BlockSpec((tm, F), lambda i: (i, 0)),              # c
        ),
        out_shape=(
            jax.ShapeDtypeStruct((N, F), f_dtype),
            jax.ShapeDtypeStruct((N, F), f_dtype),
        ),
        compiler_params=pltpu.CompilerParams(
            dimension_semantics=("parallel",),
            vmem_limit_bytes=vmem_bytes,
        ),
    )(inputs, hist, carousel, nw_packed, fw_bd, bias_packed)
    return h_out, c_out


def init_params(key, num_nodes, num_feats, dtype=jnp.float32):
    """Deterministic synthetic parameter init (gate order: forget, input, output, cell)."""
    k1, k2, k3 = jax.random.split(key, 3)
    node_w = jax.random.normal(k1, (4, num_nodes, num_nodes), dtype) * (1.0 / num_nodes ** 0.5)
    feats_w = jax.random.normal(k2, (4, num_feats, num_feats), dtype) * (1.0 / num_feats ** 0.5)
    bias = jax.random.normal(k3, (4, num_nodes, num_feats), dtype) * 0.01
    return node_w, feats_w, bias


def _reference(inputs, hist, carousel, node_w, feats_w, bias):
    """Pure-JAX f32 reference matching the assumed GGate/GLSTM semantics."""
    z = inputs + hist

    def gate(i, act):
        return act(node_w[i] @ z @ feats_w[i] + bias[i])

    f = gate(0, jax.nn.sigmoid)
    i_g = gate(1, jax.nn.sigmoid)
    o = gate(2, jax.nn.sigmoid)
    g = gate(3, jnp.tanh)
    c = f * carousel + i_g * g
    h = o * c
    return h, c


def _reference_cast(inputs, hist, carousel, node_w, feats_w, bias, wdt):
    """Reference that mirrors the kernel's cast points (for the bf16-weight path)."""
    z = (inputs + hist).astype(wdt)
    nw = node_w.astype(wdt)
    fw = feats_w.astype(wdt)

    def gate(i, act):
        y = jnp.dot(nw[i], z, preferred_element_type=jnp.float32)
        y = jnp.dot(y.astype(wdt), fw[i], preferred_element_type=jnp.float32)
        return act(y + bias[i])

    f = gate(0, jax.nn.sigmoid)
    i_g = gate(1, jax.nn.sigmoid)
    o = gate(2, jax.nn.sigmoid)
    g = gate(3, jnp.tanh)
    c = f * carousel + i_g * g
    h = o * c
    return h, c


if __name__ == "__main__":
    # Small but non-trivial: 4*num_feats = 128 -> lane-dense gate slab; 2 row tiles.
    num_nodes, num_feats = 128, 32
    row_tile = 64

    key = jax.random.PRNGKey(0)
    k_x, k_h, k_c, k_p = jax.random.split(key, 4)
    inputs = jax.random.normal(k_x, (num_nodes, num_feats), jnp.float32)
    hist = jax.random.normal(k_h, (num_nodes, num_feats), jnp.float32)
    carousel = jax.random.normal(k_c, (num_nodes, num_feats), jnp.float32)
    node_w, feats_w, bias = init_params(k_p, num_nodes, num_feats)

    h_ref, c_ref = _reference(inputs, hist, carousel, node_w, feats_w, bias)

    # f32 MXU path: tight check against the pure-JAX reference.
    h32, c32 = glstm_forward(inputs, hist, carousel, node_w, feats_w, bias,
                             row_tile=row_tile, compute_dtype=jnp.float32)
    jax.block_until_ready((h32, c32))
    assert jnp.allclose(h32, h_ref, atol=5e-4, rtol=5e-4), "h mismatch (f32)"
    assert jnp.allclose(c32, c_ref, atol=5e-4, rtol=5e-4), "c mismatch (f32)"

    # bf16-weight MXU path (default): ~2x MXU throughput, half the weight bytes;
    # f32 accumulation.  Checked against a reference with the same cast points.
    hbf, cbf = glstm_forward(inputs, hist, carousel, node_w, feats_w, bias,
                             row_tile=row_tile, compute_dtype=jnp.bfloat16)
    jax.block_until_ready((hbf, cbf))
    h_bref, c_bref = _reference_cast(inputs, hist, carousel, node_w, feats_w, bias,
                                     jnp.bfloat16)
    assert jnp.allclose(hbf, h_bref, atol=5e-3, rtol=5e-3), "h mismatch (bf16)"
    assert jnp.allclose(cbf, c_bref, atol=5e-3, rtol=5e-3), "c mismatch (bf16)"

    print("KERNEL_OK")
</pallas_src>

<mosaic_0001>
module attributes {stable_mosaic.version = 11 : i64} {
  func.func @_glstm_kernel(%arg0: i32, %arg1: memref<128x32xf32, #tpu.memory_space<vmem>>, %arg2: memref<128x32xf32, #tpu.memory_space<vmem>>, %arg3: memref<64x32xf32, #tpu.memory_space<vmem>>, %arg4: memref<1x256x128xf32, #tpu.memory_space<vmem>>, %arg5: memref<128x128xf32, #tpu.memory_space<vmem>>, %arg6: memref<64x128xf32, #tpu.memory_space<vmem>>, %arg7: memref<64x32xf32, #tpu.memory_space<vmem>>, %arg8: memref<64x32xf32, #tpu.memory_space<vmem>>) attributes {dimension_semantics = [#tpu.dimension_semantics<parallel>], iteration_bounds = array<i64: 2>, scalar_prefetch = 0 : i64, scratch_operands = 0 : i64, tpu.core_type = #tpu.core_type<tc>, window_params = [{pipeline_mode = #tpu.pipeline_mode<synchronous>, transform_indices = @transform_0, window_bounds = array<i64: 128, 32>}, {pipeline_mode = #tpu.pipeline_mode<synchronous>, transform_indices = @transform_1, window_bounds = array<i64: 128, 32>}, {transform_indices = @transform_2, window_bounds = array<i64: 64, 32>}, {transform_indices = @transform_3, window_bounds = array<i64: 1, 256, 128>}, {pipeline_mode = #tpu.pipeline_mode<synchronous>, transform_indices = @transform_4, window_bounds = array<i64: 128, 128>}, {transform_indices = @transform_5, window_bounds = array<i64: 64, 128>}, {transform_indices = @transform_6, window_bounds = array<i64: 64, 32>}, {transform_indices = @transform_7, window_bounds = array<i64: 64, 32>}]} {
    %c0 = arith.constant 0 : index
    %c0_0 = arith.constant 0 : index
    %0 = vector.load %arg1[%c0, %c0_0] : memref<128x32xf32, #tpu.memory_space<vmem>>, vector<128x32xf32>
    %c0_1 = arith.constant 0 : index
    %c0_2 = arith.constant 0 : index
    %1 = vector.load %arg2[%c0_1, %c0_2] : memref<128x32xf32, #tpu.memory_space<vmem>>, vector<128x32xf32>
    %2 = arith.addf %0, %1 : vector<128x32xf32>
    %c0_3 = arith.constant 0 : index
    %c0_4 = arith.constant 0 : index
    %c0_5 = arith.constant 0 : index
    %3 = vector.load %arg4[%c0_3, %c0_4, %c0_5] : memref<1x256x128xf32, #tpu.memory_space<vmem>>, vector<1x256x128xf32>
    %4 = vector.shape_cast %3 : vector<1x256x128xf32> to vector<256x128xf32>
    %cst = arith.constant dense<0.000000e+00> : vector<256x32xf32>
    %5 = tpu.matmul %4, %2, %cst {dimension_numbers = #tpu.dot_dimension_numbers<[1], [0], [0], [1], [0, 0, 1, 1], [], []>} : vector<256x128xf32>, vector<128x32xf32>, vector<256x32xf32> -> vector<256x32xf32>
    %6 = vector.extract_strided_slice %5 {offsets = [0, 0], sizes = [64, 32], strides = [1, 1]} : vector<256x32xf32> to vector<64x32xf32>
    %7 = vector.extract_strided_slice %5 {offsets = [64, 0], sizes = [64, 32], strides = [1, 1]} : vector<256x32xf32> to vector<64x32xf32>
    %8 = vector.extract_strided_slice %5 {offsets = [128, 0], sizes = [64, 32], strides = [1, 1]} : vector<256x32xf32> to vector<64x32xf32>
    %9 = vector.extract_strided_slice %5 {offsets = [192, 0], sizes = [64, 32], strides = [1, 1]} : vector<256x32xf32> to vector<64x32xf32>
    %10 = tpu.concatenate %6, %7, %8, %9 in 1 : vector<64x32xf32>, vector<64x32xf32>, vector<64x32xf32>, vector<64x32xf32> -> vector<64x128xf32>
    %c0_6 = arith.constant 0 : index
    %c0_7 = arith.constant 0 : index
    %11 = vector.load %arg5[%c0_6, %c0_7] : memref<128x128xf32, #tpu.memory_space<vmem>>, vector<128x128xf32>
    %cst_8 = arith.constant dense<0.000000e+00> : vector<64x128xf32>
    %12 = tpu.matmul %10, %11, %cst_8 {dimension_numbers = #tpu.dot_dimension_numbers<[1], [0], [0], [1], [0, 0, 1, 1], [], []>} : vector<64x128xf32>, vector<128x128xf32>, vector<64x128xf32> -> vector<64x128xf32>
    %c0_9 = arith.constant 0 : index
    %c0_10 = arith.constant 0 : index
    %13 = vector.load %arg6[%c0_9, %c0_10] : memref<64x128xf32, #tpu.memory_space<vmem>>, vector<64x128xf32>
    %14 = arith.addf %12, %13 : vector<64x128xf32>
    %15 = arith.negf %14 : vector<64x128xf32>
    %16 = math.exp %15 : vector<64x128xf32>
    %cst_11 = arith.constant 1.000000e+00 : f32
    %17 = vector.broadcast %cst_11 : f32 to vector<64x128xf32>
    %18 = arith.addf %17, %16 : vector<64x128xf32>
    %19 = arith.divf %17, %18 : vector<64x128xf32>
    %20 = vector.extract_strided_slice %19 {offsets = [0, 0], sizes = [64, 32], strides = [1, 1]} : vector<64x128xf32> to vector<64x32xf32>
    %21 = vector.extract_strided_slice %19 {offsets = [0, 32], sizes = [64, 32], strides = [1, 1]} : vector<64x128xf32> to vector<64x32xf32>
    %22 = vector.extract_strided_slice %19 {offsets = [0, 64], sizes = [64, 32], strides = [1, 1]} : vector<64x128xf32> to vector<64x32xf32>
    %23 = vector.extract_strided_slice %14 {offsets = [0, 96], sizes = [64, 32], strides = [1, 1]} : vector<64x128xf32> to vector<64x32xf32>
    %24 = math.tanh %23 : vector<64x32xf32>
    %c0_12 = arith.constant 0 : index
    %c0_13 = arith.constant 0 : index
    %25 = vector.load %arg3[%c0_12, %c0_13] : memref<64x32xf32, #tpu.memory_space<vmem>>, vector<64x32xf32>
    %26 = arith.mulf %20, %25 : vector<64x32xf32>
    %27 = arith.mulf %21, %24 : vector<64x32xf32>
    %28 = arith.addf %26, %27 : vector<64x32xf32>
    %29 = arith.mulf %22, %28 : vector<64x32xf32>
    %c0_14 = arith.constant 0 : index
    %c0_15 = arith.constant 0 : index
    %30 = vector.load %arg8[%c0_14, %c0_15] : memref<64x32xf32, #tpu.memory_space<vmem>>, vector<64x32xf32>
    tpu.vector_store %arg8[%c0_14, %c0_15], %28 {strides = array<i32>} : memref<64x32xf32, #tpu.memory_space<vmem>>, vector<64x32xf32>,
    %c0_16 = arith.constant 0 : index
    %c0_17 = arith.constant 0 : index
    %31 = vector.load %arg7[%c0_16, %c0_17] : memref<64x32xf32, #tpu.memory_space<vmem>>, vector<64x32xf32>
    tpu.vector_store %arg7[%c0_16, %c0_17], %29 {strides = array<i32>} : memref<64x32xf32, #tpu.memory_space<vmem>>, vector<64x32xf32>,
    return
  }
  func.func @transform_0(%arg0: i32) -> (i32, i32) {
    %c0_i32 = arith.constant 0 : i32
    %c0_i32_0 = arith.constant 0 : i32
    %c0_i32_1 = arith.constant 0 : i32
    return %c0_i32, %c0_i32_0 : i32, i32
  }
  func.func @transform_1(%arg0: i32) -> (i32, i32) {
    %c0_i32 = arith.constant 0 : i32
    %c0_i32_0 = arith.constant 0 : i32
    %c0_i32_1 = arith.constant 0 : i32
    return %c0_i32, %c0_i32_0 : i32, i32
  }
  func.func @transform_2(%arg0: i32) -> (i32, i32) {
    %c0_i32 = arith.constant 0 : i32
    %c0_i32_0 = arith.constant 0 : i32
    return %arg0, %c0_i32 : i32, i32
  }
  func.func @transform_3(%arg0: i32) -> (i32, i32, i32) {
    %c0_i32 = arith.constant 0 : i32
    %c0_i32_0 = arith.constant 0 : i32
    %c0_i32_1 = arith.constant 0 : i32
    return %arg0, %c0_i32, %c0_i32_0 : i32, i32, i32
  }
  func.func @transform_4(%arg0: i32) -> (i32, i32) {
    %c0_i32 = arith.constant 0 : i32
    %c0_i32_0 = arith.constant 0 : i32
    %c0_i32_1 = arith.constant 0 : i32
    return %c0_i32, %c0_i32_0 : i32, i32
  }
  func.func @transform_5(%arg0: i32) -> (i32, i32) {
    %c0_i32 = arith.constant 0 : i32
    %c0_i32_0 = arith.constant 0 : i32
    return %arg0, %c0_i32 : i32, i32
  }
  func.func @transform_6(%arg0: i32) -> (i32, i32) {
    %c0_i32 = arith.constant 0 : i32
    %c0_i32_0 = arith.constant 0 : i32
    return %arg0, %c0_i32 : i32, i32
  }
  func.func @transform_7(%arg0: i32) -> (i32, i32) {
    %c0_i32 = arith.constant 0 : i32
    %c0_i32_0 = arith.constant 0 : i32
    return %arg0, %c0_i32 : i32, i32
  }
}

</mosaic_0001>

<bundles_post_ra>
// kernel: tpu_custom_call.1
= control target key start
LH: loop header
LB: loop body
LE: loop exit
PB: predicated region body
PF: predicated region fallthrough
CT: control target
= control target key end

     0   :  { %13 = vsyncpa [#allocation3], 0  ;;  %s2300_s0 = inlined_call_operand.vmem [shape: f32[128,32], index: 0, kind: input, shape index: {}]   ;;  %s2301_s1 = inlined_call_operand.vmem [shape: f32[128,32], index: 1, kind: input, shape index: {}]   ;;  %s2302_s2 = inlined_call_operand.vmem [shape: f32[128,32], index: 2, kind: input, shape index: {}]   ;;  %s2303_s3 = inlined_call_operand.hbm [shape: f32[2,256,128], index: 3, kind: input, shape index: {}]   ;;  %s2304_s4 = inlined_call_operand.vmem [shape: f32[128,128], index: 4, kind: input, shape index: {}]   ;;  %s2305_s5 = inlined_call_operand.vmem [shape: f32[128,128], index: 5, kind: input, shape index: {}]   ;;  %s2306_s6 = inlined_call_operand.vmem [shape: f32[128,32], index: 6, kind: output, shape index: {0}]   ;;  %s2307_s7 = inlined_call_operand.vmem [shape: f32[128,32], index: 7, kind: output, shape index: {1}]  }
   0x1   :  { %15 = vsyncpa [#allocation3 + $0x1], 0  ;;  %s1832_s24 = smov 0   ;;  %s1834_s25 = smov 0  }
   0x2   :  { %s1836_s26 = smov 0   ;;  %s1838_s27 = smov 0  }
   0x3 LB: > { %s1280_s28 = sadd.s32 4294967295, %s1784_s27   ;;  %s1852_s29 = sadd.s32 1, %s1784_s27   ;;  %s1784_s27 = sphi %s1838_s27, %s2314_s27   ;;  %s1780_s26 = sphi %s1836_s26, %s2313_s26   ;;  %s1776_s25 = sphi %s1834_s25, %s2312_s25   ;;  %s1772_s24 = sphi %s1832_s24, %s2311_s24  }
   0x4   : > { %s93_s30 = ssub.s32 %s1784_s27, %s1852_s29  ;;  %s96_s8 = sadd.s32 1, %s1780_s26 }
   0x5   : > { %p94_p0 = scmp.eq.s32.totalorder %s93_s30, 0  ;;  %p103_p1 = scmp.ne.s32.totalorder %s1780_s26, %s1776_s25 }
   0x6   : > { %p104_p2 = scmp.eq.s32.totalorder %s1784_s27, 0  ;;  %p109_p3 = scmp.ne.s32.totalorder %s1776_s25, %s1772_s24 }
   0x7   : > { %s1862_s9 = scalar_select %p94_p0, %s1780_s26, %s96_s8  }
   0x8   : > { %p105_p4 = por %p104_p2, %p103_p1  ;;  %p110_p5 = scmp.eq.s32.totalorder %s1280_s28, 0 }
   0x9   : > { %p1574_p6 = scmp.lt.s32.totalorder %s1784_s27, 2  ;;  %s250_s11 = sand.u32 1, %s1780_s26  }
   0xa   : > { %p1867_p7 = por %p110_p5, %p109_p3  ;;  %s1284_s12 = sshll.u32 %s250_s11, 8 }
   0xb   : > { %s1307_s13 = sshll.u32 %s1784_s27, 12  ;;  %s254_s17 = scalar_lea.vmem [#allocation2], %s1284_s12 }
   0xc   : > { %s1876_s16 = scalar_lea.hbm %s2303_s3, %s1307_s13  ;;  %s261_s18 = sshll.u32 %s254_s17, 4  ;;  %s1878_s18 = int_to_ptr.vmem [resolvable:$true] %s261_s18 }
   0xd   : > { %p1880_p8 = pnand %p1574_p6, %p105_p4  ;;  %s1885_s20 = scalar_lea.sflag [#allocation3], %s250_s11 }
   0xe   : > { %s1720_s21 = scalar_lea.hbm %s1876_s16, 4096  ;;  %s1725_s24 = scalar_lea.hbm %s2303_s3, 8192 }
   0xf   : > { %p1721_p10 = scmp.ne.s32.totalorder %s1876_s16, %s1720_s21  ;;  %p1722_p11 = pneg %p1880_p8 }
  0x10   : > { %p1726_p0 = scmp.lt.u32.totalorder %s1876_s16, %s2303_s3  ;;  %p1727_p1 = scmp.lt.u32.totalorder %s1725_s24, %s1720_s21 }
  0x11   : > { %p1723_p12 = pnand %p1722_p11, %p1721_p10  ;;  %p1729_p3 = scmp.lt.u32.totalorder %s1720_s21, %s1876_s16 }
  0x12   : > { %p1728_p2 = por %p1727_p1, %p1726_p0 }
  0x13   : > { %p1724_p13 = pneg %p1723_p12 }
  0x14   : > { %p1730_p4 = por %p1729_p3, %p1728_p2 }
  0x16   : > { %p1731_p5 = pnand %p1730_p4, %p1724_p13 }
  0x18   : > { %1734 = shalt.err (!%p1731_p5)
}
  0x19   : > { %s1735_s11 = scalar_lea.vmem %s1878_s18, 4096  ;;  %s1786_s12 = smov [#allocation2]  }
  0x1a   : > { %p1736_p6 = scmp.ne.s32.totalorder %s1878_s18, %s1735_s11  ;;  %s1740_s13 = sshll.u32 %s1786_s12, 4  ;;  %s1741_s13 = int_to_ptr.vmem [resolvable:$false] %s1740_s13 }
  0x1b   : > { %s1742_s14 = scalar_lea.vmem %s1741_s13, 8192  ;;  %p1743_p9 = scmp.lt.s32.totalorder %s1878_s18, %s1741_s13 }
  0x1c   : > { %p1738_p10 = pnand %p1736_p6, %p1722_p11  ;;  %p1744_p0 = scmp.lt.s32.totalorder %s1742_s14, %s1735_s11 }
  0x1e   : > { %p1739_p12 = pneg %p1738_p10  ;;  %p1745_p1 = por %p1744_p0, %p1743_p9 }
  0x20   : > { %p1746_p2 = pnand %p1745_p1, %p1739_p12 }
  0x22   : > { %1749 = shalt.err (!%p1746_p2)
}
  0x23   : > { %s1787_s15 = smov 128   ;;  %s1788_s17 = smov 8  }
  0x24   : > { %1573 = dma.hbm_to_vmem [thread:$0]  (!%p1880_p8), %s1876_s16, 4096, %s1878_s18, %s1885_s20, %s1787_s15, %s1787_s15, %s1788_s17  }
  0x25   : > { %p278_p11 = scmp.lt.s32.totalorder %s1784_s27, 3  ;;  %p2310_p13 = scmp.ge.s32.totalorder %s1784_s27, 1 }
  0x27   : > { %p279_p3 = pnand %p2310_p13, %p278_p11 }
  0x28   : > { %s284_s21 = sand.u32 (!%p279_p3), 1, %s1776_s25  }
  0x29   : > { %282 = sbr.rel (%p279_p3) target bundleno = 1175 (0x497), region = 44  ;;  %s1288_s22 = sshll.u32 (!%p279_p3), %s284_s21, 8 }
  0x2a   : > { %s285_s23 = scalar_lea.sflag (!%p279_p3), [#allocation3], %s284_s21  ;;  %s1917_s24 = scalar_lea.vmem (!%p279_p3), [#allocation2], %s1288_s22 }
  0x30   : > { %1767 = dma.done.wait (%p1867_p7), %s285_s23, 4096  }
  0x31   : > { %1769 = vsyncadd (%p1867_p7), %s285_s23, 4294963200  ;;  %v358_v0 = vld [vmem:[%s2300_s0] sm:$0xff]  ;;  %v359_v1 = vld [vmem:[%s2300_s0 + $0x8] sm:$0xff]  ;;  %s1789_s15 = smov 32   ;;  %s1790_s17 = smov 64   ;;  %vm759_vm0 = vcmask 261120  }
  0x32   : > { %v374_v2 = vld [vmem:[%s2301_s1] sm:$0xff]  ;;  %v375_v3 = vld [vmem:[%s2301_s1 + $0x8] sm:$0xff]  ;;  %v360_v5 = vld [vmem:[%s2300_s0 + $0x10] sm:$0xff]  ;;  %s1791_s8 = smov 96   ;;  %vm768_vm1 = vcmask 523264   ;;  %vm777_vm2 = vcmask 785408  }
  0x33   : > { %v390_v4 = vadd.f32 %v374_v2, %v358_v0  ;;  %v361_v6 = vld [vmem:[%s2300_s0 + $0x18] sm:$0xff]  ;;  %v391_v7 = vadd.f32 %v375_v3, %v359_v1  ;;  %v376_v8 = vld [vmem:[%s2301_s1 + $0x10] sm:$0xff]  ;;  %v362_v10 = vld [vmem:[%s2300_s0 + $0x20] sm:$0xff] }
  0x34   : > { %v377_v9 = vld [vmem:[%s2301_s1 + $0x18] sm:$0xff]  ;;  %v392_v11 = vadd.f32 %v376_v8, %v360_v5  ;;  %v363_v13 = vld [vmem:[%s2300_s0 + $0x28] sm:$0xff]  ;;  %v378_v14 = vld [vmem:[%s2301_s1 + $0x20] sm:$0xff] }
  0x35   : > { %v393_v12 = vadd.f32 %v377_v9, %v361_v6  ;;  %v379_v15 = vld [vmem:[%s2301_s1 + $0x28] sm:$0xff]  ;;  %v1504_v16 = vpack.c.bf16 %v391_v7, %v390_v4  ;;  %v394_v17 = vadd.f32 %v378_v14, %v362_v10  ;;  %v364_v19 = vld [vmem:[%s2300_s0 + $0x30] sm:$0xff]  ;;  %v365_v21 = vld [vmem:[%s2300_s0 + $0x38] sm:$0xff] }
  0x36   : > { %v395_v18 = vadd.f32 %v379_v15, %v363_v13  ;;  %v380_v22 = vld [vmem:[%s2301_s1 + $0x30] sm:$0xff]  ;;  %v381_v23 = vld [vmem:[%s2301_s1 + $0x38] sm:$0xff]  ;;  %v366_v27 = vld [vmem:[%s2300_s0 + $0x40] sm:$0xff] }
  0x37   : > { %v1508_v20 = vpack.c.bf16 %v393_v12, %v392_v11  ;;  %1505 = vmatprep.subr.bf16.mxu0 %v1504_v16  ;;  %v396_v25 = vadd.f32 %v380_v22, %v364_v19  ;;  %v397_v26 = vadd.f32 %v381_v23, %v365_v21  ;;  %v367_v28 = vld [vmem:[%s2300_s0 + $0x48] sm:$0xff]  ;;  %v382_v29 = vld [vmem:[%s2301_s1 + $0x40] sm:$0xff]  ;;  %v368_v35 = vld [vmem:[%s2300_s0 + $0x50] sm:$0xff] }
  0x38   : > { %1507 = vmatpush3.bf16.msra.mxu0 %v1504_v16  ;;  %v1512_v24 = vpack.c.bf16 %v395_v18, %v394_v17  ;;  %v383_v30 = vld [vmem:[%s2301_s1 + $0x48] sm:$0xff]  ;;  %v406_v31 = vld [vmem:[%s1917_s24] sm:$0xff]  ;;  %v398_v33 = vadd.f32 %v382_v29, %v366_v27  ;;  %v369_v36 = vld [vmem:[%s2300_s0 + $0x58] sm:$0xff] }
  0x39   : > { %1509 = vmatprep.subr.bf16.mxu0 %v1508_v20  ;;  %1412 = vmatprep.mubr.f32.mxu0 %v406_v31  ;;  %v1516_v32 = vpack.c.bf16 %v397_v26, %v396_v25  ;;  %v399_v34 = vadd.f32 %v383_v30, %v367_v28  ;;  %v384_v37 = vld [vmem:[%s2301_s1 + $0x50] sm:$0xff]  ;;  %v385_v38 = vld [vmem:[%s2301_s1 + $0x58] sm:$0xff]  ;;  %v370_v42 = vld [vmem:[%s2300_s0 + $0x60] sm:$0xff] }
  0x3a   : > { %v400_v40 = vadd.f32 %v384_v37, %v368_v35  ;;  %v401_v41 = vadd.f32 %v385_v38, %v369_v36  ;;  %v371_v43 = vld [vmem:[%s2300_s0 + $0x68] sm:$0xff]  ;;  %v386_v44 = vld [vmem:[%s2301_s1 + $0x60] sm:$0xff]  ;;  %v372_v49 = vld [vmem:[%s2300_s0 + $0x70] sm:$0xff] }
  0x3b   : > { %v1520_v39 = vpack.c.bf16 %v399_v34, %v398_v33  ;;  %v387_v45 = vld [vmem:[%s2301_s1 + $0x68] sm:$0xff]  ;;  %v402_v47 = vadd.f32 %v386_v44, %v370_v42  ;;  %v373_v50 = vld [vmem:[%s2300_s0 + $0x78] sm:$0xff]  ;;  %v388_v51 = vld [vmem:[%s2301_s1 + $0x70] sm:$0xff] }
  0x3c   : > { %1511 = vmatpush3.bf16.msra.mxu0 %v1508_v20  ;;  %v1524_v46 = vpack.c.bf16 %v401_v41, %v400_v40  ;;  %v403_v48 = vadd.f32 %v387_v45, %v371_v43  ;;  %v389_v52 = vld [vmem:[%s2301_s1 + $0x78] sm:$0xff]  ;;  %v404_v54 = vadd.f32 %v388_v51, %v372_v49  ;;  %v407_v57 = vld [vmem:[%s1917_s24 + $0x8] sm:$0xff]  ;;  %v408_v58 = vld [vmem:[%s1917_s24 + $0x10] sm:$0xff] }
  0x3d   : > { %1513 = vmatprep.subr.bf16.mxu0 %v1512_v24  ;;  %v405_v55 = vadd.f32 %v389_v52, %v373_v50  ;;  %v409_v59 = vld [vmem:[%s1917_s24 + $0x18] sm:$0xff]  ;;  %v410_v60 = vld [vmem:[%s1917_s24 + $0x20] sm:$0xff]  ;;  %v411_v61 = vld [vmem:[%s1917_s24 + $0x28] sm:$0xff] }
  0x3e   : > { %v1528_v53 = vpack.c.bf16 %v403_v48, %v402_v47  ;;  %v412_v62 = vld [vmem:[%s1917_s24 + $0x30] sm:$0xff]  ;;  %v413_v63 = vld [vmem:[%s1917_s24 + $0x38] sm:$0xff]  ;;  %v414_v0 = vld [vmem:[%s1917_s24 + $0x40] sm:$0xff] }
  0x3f   : > { %v1532_v56 = vpack.c.bf16 %v405_v55, %v404_v54  ;;  %v415_v1 = vld [vmem:[%s1917_s24 + $0x48] sm:$0xff]  ;;  %v416_v2 = vld [vmem:[%s1917_s24 + $0x50] sm:$0xff]  ;;  %v417_v3 = vld [vmem:[%s1917_s24 + $0x58] sm:$0xff] }
  0x40   : > { %1515 = vmatpush3.bf16.msra.mxu0 %v1512_v24  ;;  %v418_v4 = vld [vmem:[%s1917_s24 + $0x60] sm:$0xff]  ;;  %v419_v5 = vld [vmem:[%s1917_s24 + $0x68] sm:$0xff]  ;;  %v420_v6 = vld [vmem:[%s1917_s24 + $0x70] sm:$0xff] }
  0x41   : > { %1517 = vmatprep.subr.bf16.mxu0 %v1516_v32  ;;  %v421_v7 = vld [vmem:[%s1917_s24 + $0x78] sm:$0xff]  ;;  %v422_v8 = vld [vmem:[%s1917_s24 + $0x80] sm:$0xff]  ;;  %v423_v9 = vld [vmem:[%s1917_s24 + $0x88] sm:$0xff] }
  0x42   : > { %v424_v10 = vld [vmem:[%s1917_s24 + $0x90] sm:$0xff]  ;;  %v425_v11 = vld [vmem:[%s1917_s24 + $0x98] sm:$0xff]  ;;  %v426_v12 = vld [vmem:[%s1917_s24 + $0xa0] sm:$0xff] }
  0x43   : > { %v427_v13 = vld [vmem:[%s1917_s24 + $0xa8] sm:$0xff]  ;;  %v428_v14 = vld [vmem:[%s1917_s24 + $0xb0] sm:$0xff]  ;;  %v429_v15 = vld [vmem:[%s1917_s24 + $0xb8] sm:$0xff] }
  0x44   : > { %1519 = vmatpush3.bf16.msra.mxu0 %v1516_v32  ;;  %v430_v16 = vld [vmem:[%s1917_s24 + $0xc0] sm:$0xff]  ;;  %v431_v17 = vld [vmem:[%s1917_s24 + $0xc8] sm:$0xff]  ;;  %v432_v18 = vld [vmem:[%s1917_s24 + $0xd0] sm:$0xff] }
  0x45   : > { %1521 = vmatprep.subr.bf16.mxu0 %v1520_v39  ;;  %v433_v19 = vld [vmem:[%s1917_s24 + $0xd8] sm:$0xff]  ;;  %v434_v20 = vld [vmem:[%s1917_s24 + $0xe0] sm:$0xff]  ;;  %v435_v21 = vld [vmem:[%s1917_s24 + $0xe8] sm:$0xff] }
  0x46   : > { %v436_v22 = vld [vmem:[%s1917_s24 + $0xf0] sm:$0xff]  ;;  %v437_v23 = vld [vmem:[%s1917_s24 + $0xf8] sm:$0xff]  ;;  %v786_v29 = vld [vmem:[%s2304_s4] sm:$0xff] }
  0x47   : > { %v787_v30 = vld [vmem:[%s2304_s4 + $0x8] sm:$0xff]  ;;  %v788_v34 = vld [vmem:[%s2304_s4 + $0x10] sm:$0xff]  ;;  %v789_v35 = vld [vmem:[%s2304_s4 + $0x18] sm:$0xff] }
  0x48   : > { %1523 = vmatpush3.bf16.msra.mxu0 %v1520_v39  ;;  %v1536_v32 = vpack.c.bf16 %v787_v30, %v786_v29  ;;  %v1540_v37 = vpack.c.bf16 %v789_v35, %v788_v34  ;;  %v790_v38 = vld [vmem:[%s2304_s4 + $0x20] sm:$0xff]  ;;  %v791_v39 = vld [vmem:[%s2304_s4 + $0x28] sm:$0xff]  ;;  %v792_v45 = vld [vmem:[%s2304_s4 + $0x30] sm:$0xff] }
  0x49   : > { %1525 = vmatprep.subr.bf16.mxu0 %v1524_v46  ;;  %v1544_v41 = vpack.c.bf16 %v791_v39, %v790_v38  ;;  %v794_v51 = vld [vmem:[%s2304_s4 + $0x40] sm:$0xff]  ;;  %v795_v52 = vld [vmem:[%s2304_s4 + $0x48] sm:$0xff] }
  0x4a   : > { %1537 = vmatprep.subr.bf16.mxu1 %v1536_v32  ;;  %v1552_v54 = vpack.c.bf16 %v795_v52, %v794_v51 }
  0x4b   : > { %1539 = vmatpush3.bf16.msra.mxu1 %v1536_v32 }
  0x4c   : > { %1527 = vmatpush3.bf16.msra.mxu0 %v1524_v46  ;;  %1541 = vmatprep.subr.bf16.mxu1 %v1540_v37  ;;  %v793_v46 = vld [vmem:[%s2304_s4 + $0x38] sm:$0xff] }
  0x4d   : > { %1529 = vmatprep.subr.bf16.mxu0 %v1528_v53  ;;  %v1548_v48 = vpack.c.bf16 %v793_v46, %v792_v45 }
  0x4f   : > { %1543 = vmatpush3.bf16.msra.mxu1 %v1540_v37 }
  0x50   : > { %1531 = vmatpush3.bf16.msra.mxu0 %v1528_v53  ;;  %1545 = vmatprep.subr.bf16.mxu1 %v1544_v41 }
  0x51   : > { %1533 = vmatprep.subr.bf16.mxu0 %v1532_v56 }
  0x53   : > { %1547 = vmatpush3.bf16.msra.mxu1 %v1544_v41 }
  0x54   : > { %1535 = vmatpush3.bf16.msra.mxu0 %v1532_v56  ;;  %1549 = vmatprep.subr.bf16.mxu1 %v1548_v48 }
  0x57   : > { %1413 = vmatmul.mubr.f32.vlgmr.msra.gmra.mrb[0].mxu0 %v407_v57  ;;  %1551 = vmatpush3.bf16.msra.mxu1 %v1548_v48  ;;  %v796_v57 = vld [vmem:[%s2304_s4 + $0x50] sm:$0xff] }
  0x58   : > { %1415 = vmatprep.mubr.f32.mxu0 %v408_v58  ;;  %1553 = vmatprep.subr.bf16.mxu1 %v1552_v54  ;;  %v797_v58 = vld [vmem:[%s2304_s4 + $0x58] sm:$0xff] }
  0x5b   : > { %1416 = vmatmul.mubr.f32.gmra.mrb[2].mxu0 %v409_v59  ;;  %1555 = vmatpush3.bf16.msra.mxu1 %v1552_v54 }
  0x5c   : > { %1418 = vmatprep.mubr.f32.mxu0 %v410_v60  ;;  %v1556_v60 = vpack.c.bf16 %v797_v58, %v796_v57 }
  0x5e   : > { %1557 = vmatprep.subr.bf16.mxu1 %v1556_v60 }
  0x5f   : > { %1419 = vmatmul.mubr.f32.gmra.mrb[4].mxu0 %v411_v61  ;;  %1559 = vmatpush3.bf16.msra.mxu1 %v1556_v60 }
  0x60   : > { %1421 = vmatprep.mubr.f32.mxu0 %v412_v62  ;;  %v798_v62 = vld [vmem:[%s2304_s4 + $0x60] sm:$0xff] }
  0x63   : > { %1422 = vmatmul.mubr.f32.gmra.mrb[6].mxu0 %v413_v63  ;;  %v799_v63 = vld [vmem:[%s2304_s4 + $0x68] sm:$0xff] }
  0x64   : > { %1424 = vmatprep.mubr.f32.mxu0 %v414_v0 }
  0x67   : > { %1425 = vmatmul.mubr.f32.gmra.mrb[8].mxu0 %v415_v1  ;;  %v1560_v1 = vpack.c.bf16 %v799_v63, %v798_v62 }
  0x68   : > { %1427 = vmatprep.mubr.f32.mxu0 %v416_v2 }
  0x69   : > { %1561 = vmatprep.subr.bf16.mxu1 %v1560_v1 }
  0x6a   : > { %1563 = vmatpush3.bf16.msra.mxu1 %v1560_v1 }
  0x6b   : > { %1428 = vmatmul.mubr.f32.gmra.mrb[10].mxu0 %v417_v3 }
  0x6c   : > { %1430 = vmatprep.mubr.f32.mxu0 %v418_v4 }
  0x6f   : > { %1431 = vmatmul.mubr.f32.gmra.mrb[12].mxu0 %v419_v5  ;;  %v800_v5 = vld [vmem:[%s2304_s4 + $0x70] sm:$0xff] }
  0x70   : > { %1433 = vmatprep.mubr.f32.mxu0 %v420_v6  ;;  %v801_v6 = vld [vmem:[%s2304_s4 + $0x78] sm:$0xff] }
  0x73   : > { %1434 = vmatmul.mubr.f32.gmra.mrb[14].mxu0 %v421_v7 }
  0x74   : > { %1436 = vmatprep.mubr.f32.mxu0 %v422_v8  ;;  %v1564_v8 = vpack.c.bf16 %v801_v6, %v800_v5 }
  0x76   : > { %1565 = vmatprep.subr.bf16.mxu1 %v1564_v8 }
  0x77   : > { %1437 = vmatmul.mubr.f32.gmra.mrb[16].mxu0 %v423_v9  ;;  %1567 = vmatpush3.bf16.msra.mxu1 %v1564_v8 }
  0x78   : > { %1439 = vmatprep.mubr.f32.mxu0 %v424_v10 }
  0x7b   : > { %1440 = vmatmul.mubr.f32.gmra.mrb[18].mxu0 %v425_v11 }
  0x7c   : > { %1442 = vmatprep.mubr.f32.mxu0 %v426_v12 }
  0x7f   : > { %1443 = vmatmul.mubr.f32.gmra.mrb[20].mxu0 %v427_v13 }
  0x80   : > { %1445 = vmatprep.mubr.f32.mxu0 %v428_v14 }
  0x83   : > { %1446 = vmatmul.mubr.f32.gmra.mrb[22].mxu0 %v429_v15 }
  0x84   : > { %1448 = vmatprep.mubr.f32.mxu0 %v430_v16 }
  0x87   : > { %1449 = vmatmul.mubr.f32.gmra.mrb[24].mxu0 %v431_v17 }
  0x88   : > { %1451 = vmatprep.mubr.f32.mxu0 %v432_v18 }
  0x8b   : > { %1452 = vmatmul.mubr.f32.gmra.mrb[26].mxu0 %v433_v19 }
  0x8c   : > { %1454 = vmatprep.mubr.f32.mxu0 %v434_v20 }
  0x8f   : > { %1455 = vmatmul.mubr.f32.gmra.mrb[28].mxu0 %v435_v21 }
  0x90   : > { %1457 = vmatprep.mubr.f32.mxu0 %v436_v22 }
  0x93   : > { %1458 = vmatmul.mubr.f32.gmra.mrb[30].mxu0 %v437_v23 }
 0x12a   : > { %v2051_v24 = vpop.f32.mrb[0].mxu0 }
 0x12b   : > { %v2053_v25 = vpop.f32.mrb[1].mxu0 }
 0x12e   : > { %v2055_v26 = vpop.f32.mrb[2].mxu0 }
 0x12f   : > { %v2057_v27 = vpop.f32.mrb[3].mxu0 }
 0x132   : > { %v2059_v28 = vpop.f32.mrb[4].mxu0 }
 0x133   : > { %v2067_v31 = vpop.f32.mrb[5].mxu0 }
 0x136   : > { %v2069_v33 = vpop.f32.mrb[6].mxu0 }
 0x137   : > { %v2077_v36 = vpop.f32.mrb[7].mxu0 }
 0x13a   : > { %v1426_v40 = vpop.f32.mrb[8].mxu0 }
 0x13b   : > { %v544_v42 = vpop.f32.mrb[9].mxu0 }
 0x13c   : > { %v1612_v43 = vpack.i.bf16 %v1426_v40, %v544_v42 }
 0x13e   : > { %1613 = vrot.lane.b32.xlu0 %v1612_v43, %s1789_s15  ;;  %v1429_v44 = vpop.f32.mrb[10].mxu0 }
 0x13f   : > { %v554_v47 = vpop.f32.mrb[11].mxu0 }
 0x140   : > { %v1617_v49 = vpack.i.bf16 %v1429_v44, %v554_v47 }
 0x142   : > { %1618 = vrot.lane.b32.xlu1 %v1617_v49, %s1789_s15  ;;  %v1432_v50 = vpop.f32.mrb[12].mxu0 }
 0x143   : > { %v564_v53 = vpop.f32.mrb[13].mxu0 }
 0x144   : > { %v1622_v55 = vpack.i.bf16 %v1432_v50, %v564_v53 }
 0x146   : > { %1623 = vrot.lane.b32.xlu0 %v1622_v55, %s1789_s15  ;;  %v1435_v56 = vpop.f32.mrb[14].mxu0 }
 0x147   : > { %v574_v59 = vpop.f32.mrb[15].mxu0 }
 0x148   : > { %v1652_v61 = vpack.i.bf16 %v1435_v56, %v574_v59 }
 0x14a   : > { %v1438_v0 = vpop.f32.mrb[16].mxu0 }
 0x14b   : > { %v584_v2 = vpop.f32.mrb[17].mxu0 }
 0x14c   : > { %v1627_v3 = vpack.i.bf16 %v1438_v0, %v584_v2 }
 0x14e   : > { %1628 = vrot.lane.b32.xlu0 %v1627_v3, %s1790_s17  ;;  %v1441_v4 = vpop.f32.mrb[18].mxu0 }
 0x14f   : > { %v594_v7 = vpop.f32.mrb[19].mxu0 }
 0x150   : > { %v1632_v9 = vpack.i.bf16 %v1441_v4, %v594_v7 }
 0x152   : > { %1633 = vrot.lane.b32.xlu0 %v1632_v9, %s1790_s17  ;;  %v1444_v10 = vpop.f32.mrb[20].mxu0 }
 0x153   : > { %v604_v11 = vpop.f32.mrb[21].mxu0 }
 0x154   : > { %v1637_v12 = vpack.i.bf16 %v1444_v10, %v604_v11 }
 0x156   : > { %1638 = vrot.lane.b32.xlu1 %v1637_v12, %s1790_s17  ;;  %v1447_v13 = vpop.f32.mrb[22].mxu0 }
 0x157   : > { %v614_v14 = vpop.f32.mrb[23].mxu0 }
 0x158   : > { %v1662_v15 = vpack.i.bf16 %v1447_v13, %v614_v14 }
 0x15a   : > { %v1450_v16 = vpop.f32.mrb[24].mxu0 }
 0x15b   : > { %v624_v17 = vpop.f32.mrb[25].mxu0 }
 0x15c   : > { %v1642_v18 = vpack.i.bf16 %v1450_v16, %v624_v17 }
 0x15e   : > { %1643 = vrot.lane.b32.xlu1 %v1642_v18, %s1791_s8  ;;  %v1453_v19 = vpop.f32.mrb[26].mxu0 }
 0x15f   : > { %v634_v20 = vpop.f32.mrb[27].mxu0 }
 0x160   : > { %v1647_v21 = vpack.i.bf16 %v1453_v19, %v634_v20 }
 0x162   : > { %1648 = vrot.lane.b32.xlu1 %v1647_v21, %s1791_s8  ;;  %v1456_v22 = vpop.f32.mrb[28].mxu0 }
 0x163   : > { %v644_v23 = vpop.f32.mrb[29].mxu0 }
 0x164   : > { %v1657_v29 = vpack.i.bf16 %v1456_v22, %v644_v23 }
 0x166   : > { %1653 = vrot.lane.b32.xlu1 %v1652_v61, %s1789_s15  ;;  %1658 = vrot.lane.b32.xlu0 %v1657_v29, %s1791_s8  ;;  %v1459_v30 = vpop.f32.mrb[30].mxu0  ;;  %s1289_s15 = sshll.u32 %s1280_s28, 3 }
 0x167   : > { %v654_v32 = vpop.f32.mrb[31].mxu0  ;;  %p335_p7 = scmp.lt.s32.totalorder %s1289_s15, 15 }
 0x168   : > { %v1667_v34 = vpack.i.bf16 %v1459_v30, %v654_v32 }
 0x169   : > { %s2316_s15 = smov (!%p335_p7, %s1289_s15), 15 }
 0x16a   : > { %1663 = vrot.lane.b32.xlu0 %v1662_v15, %s1790_s17  ;;  %1668 = vrot.lane.b32.xlu1 %v1667_v34, %s1791_s8  ;;  %s2161_s16 = sshll.u32 %s2316_s15, 3 }
 0x16b   : > { %s344_s19 = scalar_lea.vmem %s2305_s5, %s2161_s16  ;;  %s2211_s20 = scalar_lea.vmem %s2302_s2, %s2161_s16 }
 0x16c   : > { %s2220_s13 = scalar_lea.vmem %s2307_s7, %s2161_s16  ;;  %s350_s21 = scalar_lea.vmem %s2306_s6, %s2161_s16 }
 0x1b0   : > { %v1614_v35 = vpop.permute.xlu0 %1613 }
 0x1b1   : > { %v1616_v41 = vunpack.i.h.bf16 %v1614_v35  ;;  %v1615_v42 = vunpack.i.l.bf16 %v1614_v35 }
 0x1b3   : > { %v760_v51 = vsel %vm759_vm0, %v2053_v25, %v1615_v42  ;;  %v761_v52 = vsel %vm759_vm0, %v2051_v24, %v1616_v41 }
 0x1b4   : > { %v1619_v38 = vpop.permute.xlu1 %1618 }
 0x1b5   : > { %v1621_v46 = vunpack.i.h.bf16 %v1619_v38  ;;  %v1620_v47 = vunpack.i.l.bf16 %v1619_v38  ;;  %v805_v38 = vld [vmem:[%s344_s19 + $0x18] sm:$0xff] }
 0x1b7   : > { %v762_v60 = vsel %vm759_vm0, %v2057_v27, %v1620_v47  ;;  %v763_v25 = vsel %vm759_vm0, %v2055_v26, %v1621_v46 }
 0x1b8   : > { %v1624_v37 = vpop.permute.xlu0 %1623 }
 0x1b9   : > { %v1626_v61 = vunpack.i.h.bf16 %v1624_v37  ;;  %v1625_v24 = vunpack.i.l.bf16 %v1624_v37 }
 0x1bb   : > { %v764_v8 = vsel %vm759_vm0, %v2067_v31, %v1625_v24  ;;  %v765_v9 = vsel %vm759_vm0, %v2059_v28, %v1626_v61 }
 0x1c0   : > { %v1629_v39 = vpop.permute.xlu0 %1628 }
 0x1c1   : > { %v1631_v43 = vunpack.i.h.bf16 %v1629_v39  ;;  %v1630_v44 = vunpack.i.l.bf16 %v1629_v39  ;;  %v804_v39 = vld [vmem:[%s344_s19 + $0x10] sm:$0xff] }
 0x1c3   : > { %v769_v55 = vsel %vm768_vm1, %v760_v51, %v1630_v44  ;;  %v770_v56 = vsel %vm768_vm1, %v761_v52, %v1631_v43  ;;  %v807_v44 = vld [vmem:[%s344_s19 + $0x28] sm:$0xff]  ;;  %v808_v51 = vld [vmem:[%s344_s19 + $0x30] sm:$0xff] }
 0x1c4   : > { %v1634_v45 = vpop.permute.xlu0 %1633 }
 0x1c5   : > { %v1636_v53 = vunpack.i.h.bf16 %v1634_v45  ;;  %v1635_v54 = vunpack.i.l.bf16 %v1634_v45  ;;  %v806_v45 = vld [vmem:[%s344_s19 + $0x20] sm:$0xff] }
 0x1c7   : > { %v771_v2 = vsel %vm768_vm1, %v762_v60, %v1635_v54  ;;  %v772_v3 = vsel %vm768_vm1, %v763_v25, %v1636_v53 }
 0x1c8   : > { %v1639_v40 = vpop.permute.xlu1 %1638 }
 0x1c9   : > { %v1641_v0 = vunpack.i.h.bf16 %v1639_v40  ;;  %v1640_v1 = vunpack.i.l.bf16 %v1639_v40 }
 0x1cb   : > { %v773_v12 = vsel %vm768_vm1, %v764_v8, %v1640_v1  ;;  %v774_v13 = vsel %vm768_vm1, %v765_v9, %v1641_v0 }
 0x1d0   : > { %v1644_v48 = vpop.permute.xlu1 %1643 }
 0x1d1   : > { %v1646_v49 = vunpack.i.h.bf16 %v1644_v48  ;;  %v1645_v50 = vunpack.i.l.bf16 %v1644_v48 }
 0x1d3   : > { %v778_v57 = vsel %vm777_vm2, %v769_v55, %v1645_v50  ;;  %v779_v58 = vsel %vm777_vm2, %v770_v56, %v1646_v49  ;;  %v809_v50 = vld [vmem:[%s344_s19 + $0x38] sm:$0xff] }
 0x1d4   : > { %1492 = vmatprep.mubr.f32.mxu1 %v778_v57  ;;  %v1649_v59 = vpop.permute.xlu1 %1648 }
 0x1d5   : > { %v1651_v62 = vunpack.i.h.bf16 %v1649_v59  ;;  %v1650_v63 = vunpack.i.l.bf16 %v1649_v59  ;;  %1493 = vmatmul.mubr.f32.vlgmr.msra.gmra.mrb[0].mxu1 %v779_v58 }
 0x1d7   : > { %v780_v4 = vsel %vm777_vm2, %v771_v2, %v1650_v63  ;;  %v781_v5 = vsel %vm777_vm2, %v772_v3, %v1651_v62 }
 0x1d8   : > { %v1654_v6 = vpop.permute.xlu1 %1653  ;;  %1495 = vmatprep.mubr.f32.mxu1 %v780_v4  ;;  %v1659_v27 = vpop.permute.xlu0 %1658 }
 0x1d9   : > { %v1661_v7 = vunpack.i.h.bf16 %v1659_v27  ;;  %v1660_v26 = vunpack.i.l.bf16 %v1659_v27  ;;  %1496 = vmatmul.mubr.f32.gmra.mrb[2].mxu1 %v781_v5  ;;  %v1656_v10 = vunpack.i.h.bf16 %v1654_v6  ;;  %v1655_v11 = vunpack.i.l.bf16 %v1654_v6 }
 0x1db   : > { %v782_v14 = vsel %vm777_vm2, %v773_v12, %v1660_v26  ;;  %v783_v15 = vsel %vm777_vm2, %v774_v13, %v1661_v7  ;;  %v766_v28 = vsel %vm759_vm0, %v2077_v36, %v1655_v11  ;;  %v767_v21 = vsel %vm759_vm0, %v2069_v33, %v1656_v10  ;;  %v803_v33 = vld [vmem:[%s344_s19 + $0x8] sm:$0xff]  ;;  %v802_v36 = vld [vmem:[%s344_s19] sm:$0xff] }
 0x1dc   : > { %v1664_v16 = vpop.permute.xlu0 %1663  ;;  %1498 = vmatprep.mubr.f32.mxu1 %v782_v14  ;;  %v1669_v17 = vpop.permute.xlu1 %1668 }
 0x1dd   : > { %v1666_v18 = vunpack.i.h.bf16 %v1664_v16  ;;  %v1665_v19 = vunpack.i.l.bf16 %v1664_v16  ;;  %v1671_v31 = vunpack.i.h.bf16 %v1669_v17  ;;  %v1670_v20 = vunpack.i.l.bf16 %v1669_v17  ;;  %1499 = vmatmul.mubr.f32.gmra.mrb[4].mxu1 %v783_v15 }
 0x1df   : > { %v775_v22 = vsel %vm768_vm1, %v766_v28, %v1665_v19  ;;  %v776_v23 = vsel %vm768_vm1, %v767_v21, %v1666_v18 }
 0x1e0   : > { %v784_v29 = vsel %vm777_vm2, %v775_v22, %v1670_v20  ;;  %v785_v30 = vsel %vm777_vm2, %v776_v23, %v1671_v31 }
 0x1e1   : > { %1501 = vmatprep.mubr.f32.mxu1 %v784_v29 }
 0x1e2   : > { %1502 = vmatmul.mubr.f32.gmra.mrb[6].mxu1 %v785_v30 }
 0x2a8   : > { %v1494_v32 = vpop.f32.mrb[0].mxu1 }
 0x2a9   : > { %v882_v34 = vadd.f32 %v1494_v32, %v803_v33  ;;  %v876_v35 = vpop.f32.mrb[1].mxu1 }
 0x2aa   : > { %v877_v37 = vadd.f32 %v876_v35, %v802_v36 }
 0x2ab   : > { %1672 = vtanh.f32 %v882_v34  ;;  %v1298_v62 = vmul.f32 -1.442695, %v882_v34 }
 0x2ac   : > { %1674 = vtanh.f32 %v877_v37  ;;  %v1497_v40 = vpop.f32.mrb[2].mxu1  ;;  %v1297_v63 = vmul.f32 -1.442695, %v877_v37 }
 0x2ad   : > { %v892_v41 = vadd.f32 %v1497_v40, %v805_v38  ;;  %v886_v42 = vpop.f32.mrb[3].mxu1 }
 0x2ae   : > { %v887_v43 = vadd.f32 %v886_v42, %v804_v39 }
 0x2af   : > { %1676 = vtanh.f32 %v892_v41  ;;  %v1300_v0 = vmul.f32 -1.442695, %v892_v41 }
 0x2b0   : > { %1678 = vtanh.f32 %v887_v43  ;;  %v1500_v46 = vpop.f32.mrb[4].mxu1  ;;  %v1299_v1 = vmul.f32 -1.442695, %v887_v43 }
 0x2b1   : > { %v902_v47 = vadd.f32 %v1500_v46, %v807_v44  ;;  %v896_v48 = vpop.f32.mrb[5].mxu1 }
 0x2b2   : > { %v897_v49 = vadd.f32 %v896_v48, %v806_v45  ;;  %v972_v48 = vld [vmem:[%s2211_s20 + $0x8] sm:$0xff] }
 0x2b3   : > { %1680 = vtanh.f32 %v902_v47  ;;  %v1302_v2 = vmul.f32 -1.442695, %v902_v47 }
 0x2b4   : > { %1682 = vtanh.f32 %v897_v49  ;;  %v1301_v3 = vmul.f32 -1.442695, %v897_v49  ;;  %v971_v49 = vld [vmem:[%s2211_s20] sm:$0xff] }
 0x2b5   : > { %v1673_v52 = vpop.eup %1672  ;;  %v1503_v53 = vpop.f32.mrb[6].mxu1 }
 0x2b6   : > { %v1675_v54 = vpop.eup %1674  ;;  %v912_v55 = vadd.f32 %v1503_v53, %v809_v50  ;;  %997 = vrot.lane.b32.xlu1 %v1673_v52, %s1790_s17  ;;  %v906_v56 = vpop.f32.mrb[7].mxu1  ;;  %v974_v53 = vld [vmem:[%s2211_s20 + $0x18] sm:$0xff] }
 0x2b7   : > { %v907_v57 = vadd.f32 %v906_v56, %v808_v51  ;;  %995 = vrot.lane.b32.xlu0 %v1675_v54, %s1790_s17  ;;  %v973_v56 = vld [vmem:[%s2211_s20 + $0x10] sm:$0xff] }
 0x2b8   : > { %1684 = vtanh.f32 %v912_v55  ;;  %v1304_v4 = vmul.f32 -1.442695, %v912_v55 }
 0x2b9   : > { %v1677_v58 = vpop.eup %1676  ;;  %1686 = vtanh.f32 %v907_v57  ;;  %v1303_v6 = vmul.f32 -1.442695, %v907_v57 }
 0x2ba   : > { %v1679_v59 = vpop.eup %1678  ;;  %1001 = vrot.lane.b32.xlu1 %v1677_v58, %s1790_s17  ;;  %1688 = vpow2.f32 %v1298_v62  ;;  %v975_v62 = vld [vmem:[%s2211_s20 + $0x20] sm:$0xff] }
 0x2bb   : > { %999 = vrot.lane.b32.xlu0 %v1679_v59, %s1790_s17  ;;  %1690 = vpow2.f32 %v1297_v63 }
 0x2bc   : > { %1692 = vpow2.f32 %v1300_v0 }
 0x2bd   : > { %v1681_v60 = vpop.eup %1680  ;;  %1694 = vpow2.f32 %v1299_v1 }
 0x2be   : > { %v1683_v25 = vpop.eup %1682  ;;  %1005 = vrot.lane.b32.xlu1 %v1681_v60, %s1790_s17  ;;  %1696 = vpow2.f32 %v1302_v2 }
 0x2bf   : > { %1003 = vrot.lane.b32.xlu0 %v1683_v25, %s1790_s17  ;;  %1698 = vpow2.f32 %v1301_v3  ;;  %v976_v25 = vld [vmem:[%s2211_s20 + $0x28] sm:$0xff] }
 0x2c0   : > { %1700 = vpow2.f32 %v1304_v4 }
 0x2c1   : > { %1702 = vpow2.f32 %v1303_v6 }
 0x2c2   : > { %v1685_v61 = vpop.eup %1684 }
 0x2c3   : > { %v1687_v24 = vpop.eup %1686  ;;  %1009 = vrot.lane.b32.xlu1 %v1685_v61, %s1790_s17 }
 0x2c4   : > { %1007 = vrot.lane.b32.xlu0 %v1687_v24, %s1790_s17  ;;  %v1689_v5 = vpop.eup %1688 }
 0x2c5   : > { %v1691_v27 = vpop.eup %1690  ;;  %v940_v7 = vadd.f32 1.0, %v1689_v5  ;;  %v978_v5 = vld [vmem:[%s2211_s20 + $0x38] sm:$0xff] }
 0x2c6   : > { %v1693_v26 = vpop.eup %1692  ;;  %v939_v8 = vadd.f32 1.0, %v1691_v27  ;;  %v977_v27 = vld [vmem:[%s2211_s20 + $0x30] sm:$0xff] }
 0x2c7   : > { %v1695_v9 = vpop.eup %1694  ;;  %1704 = vrcp.f32 %v940_v7  ;;  %v942_v10 = vadd.f32 1.0, %v1693_v26 }
 0x2c8   : > { %v1697_v11 = vpop.eup %1696  ;;  %1706 = vrcp.f32 %v939_v8  ;;  %v941_v12 = vadd.f32 1.0, %v1695_v9 }
 0x2c9   : > { %v1699_v13 = vpop.eup %1698  ;;  %1708 = vrcp.f32 %v942_v10  ;;  %v944_v14 = vadd.f32 1.0, %v1697_v11 }
 0x2ca   : > { %1710 = vrcp.f32 %v941_v12  ;;  %v943_v15 = vadd.f32 1.0, %v1699_v13  ;;  %v1701_v16 = vpop.eup %1700 }
 0x2cb   : > { %v1703_v17 = vpop.eup %1702  ;;  %1712 = vrcp.f32 %v944_v14  ;;  %v946_v18 = vadd.f32 1.0, %v1701_v16 }
 0x2cc   : > { %1714 = vrcp.f32 %v943_v15  ;;  %v945_v31 = vadd.f32 1.0, %v1703_v17 }
 0x2cd   : > { %1716 = vrcp.f32 %v946_v18 }
 0x2ce   : > { %1718 = vrcp.f32 %v945_v31 }
 0x2d1   : > { %v2175_v19 = vpop.eup %1704 }
 0x2d2   : > { %v2177_v28 = vpop.eup %1706  ;;  %v980_v50 = vmul.f32 %v2175_v19, %v972_v48 }
 0x2d3   : > { %v2182_v29 = vpop.eup %1708  ;;  %v979_v52 = vmul.f32 %v2177_v28, %v971_v49 }
 0x2d4   : > { %v2185_v33 = vpop.eup %1710  ;;  %v982_v58 = vmul.f32 %v2182_v29, %v974_v53 }
 0x2d5   : > { %v2190_v35 = vpop.eup %1712  ;;  %v981_v60 = vmul.f32 %v2185_v33, %v973_v56 }
 0x2d6   : > { %v2193_v38 = vpop.eup %1714  ;;  %v984_v0 = vmul.f32 %v2190_v35, %v976_v25 }
 0x2d7   : > { %v2199_v42 = vpop.eup %1716  ;;  %v983_v2 = vmul.f32 %v2193_v38, %v975_v62 }
 0x2d8   : > { %v2201_v44 = vpop.eup %1718  ;;  %v986_v7 = vmul.f32 %v2199_v42, %v978_v5 }
 0x2d9   : > { %v985_v8 = vmul.f32 %v2201_v44, %v977_v27 }
 0x328   : > { %v998_v20 = vpop.permute.xlu1 %997 }
 0x329   : > { %v1020_v21 = vmul.f32 %v2175_v19, %v998_v20  ;;  %v996_v22 = vpop.permute.xlu0 %995 }
 0x32a   : > { %v1019_v23 = vmul.f32 %v2177_v28, %v996_v22 }
 0x32b   : > { %1037 = vrot.lane.b32.xlu1 %v1020_v21, %s1791_s8 }
 0x32c   : > { %v1002_v30 = vpop.permute.xlu1 %1001  ;;  %1035 = vrot.lane.b32.xlu0 %v1019_v23, %s1791_s8 }
 0x32d   : > { %v1022_v36 = vmul.f32 %v2182_v29, %v1002_v30  ;;  %v1000_v32 = vpop.permute.xlu0 %999 }
 0x32e   : > { %v1021_v34 = vmul.f32 %v2185_v33, %v1000_v32 }
 0x32f   : > { %1041 = vrot.lane.b32.xlu1 %v1022_v36, %s1791_s8 }
 0x330   : > { %v1006_v37 = vpop.permute.xlu1 %1005  ;;  %1039 = vrot.lane.b32.xlu0 %v1021_v34, %s1791_s8 }
 0x331   : > { %v1024_v39 = vmul.f32 %v2190_v35, %v1006_v37  ;;  %v1004_v40 = vpop.permute.xlu0 %1003 }
 0x332   : > { %v1023_v41 = vmul.f32 %v2193_v38, %v1004_v40 }
 0x333   : > { %1045 = vrot.lane.b32.xlu1 %v1024_v39, %s1791_s8 }
 0x334   : > { %1043 = vrot.lane.b32.xlu0 %v1023_v41, %s1791_s8 }
 0x335   : > { %v1010_v43 = vpop.permute.xlu1 %1009 }
 0x336   : > { %v1026_v45 = vmul.f32 %v2199_v42, %v1010_v43  ;;  %v1008_v46 = vpop.permute.xlu0 %1007 }
 0x337   : > { %v1025_v47 = vmul.f32 %v2201_v44, %v1008_v46 }
 0x338   : > { %1049 = vrot.lane.b32.xlu1 %v1026_v45, %s1791_s8 }
 0x339   : > { %1047 = vrot.lane.b32.xlu0 %v1025_v47, %s1791_s8 }
 0x39d   : > { %v1038_v51 = vpop.permute.xlu1 %1037 }
 0x39e   : > { %v1060_v54 = vadd.f32 %v1038_v51, %v980_v50  ;;  %v1036_v55 = vpop.permute.xlu0 %1035 }
 0x39f   : > { %v1059_v57 = vadd.f32 %v1036_v55, %v979_v52 }
 0x3a0   : > { %1108 = vst.msk [vmem:[%s2220_s13 + $0x8] sm:$0xff] %vm759_vm0, %v1060_v54  ;;  %1077 = vrot.lane.b32.xlu1 %v1060_v54, %s1790_s17 }
 0x3a1   : > { %1107 = vst.msk [vmem:[%s2220_s13] sm:$0xff] %vm759_vm0, %v1059_v57  ;;  %v1042_v59 = vpop.permute.xlu1 %1041  ;;  %1075 = vrot.lane.b32.xlu0 %v1059_v57, %s1790_s17 }
 0x3a2   : > { %v1062_v61 = vadd.f32 %v1042_v59, %v982_v58  ;;  %v1040_v24 = vpop.permute.xlu0 %1039 }
 0x3a3   : > { %v1061_v63 = vadd.f32 %v1040_v24, %v981_v60 }
 0x3a4   : > { %1110 = vst.msk [vmem:[%s2220_s13 + $0x18] sm:$0xff] %vm759_vm0, %v1062_v61  ;;  %1081 = vrot.lane.b32.xlu1 %v1062_v61, %s1790_s17 }
 0x3a5   : > { %1109 = vst.msk [vmem:[%s2220_s13 + $0x10] sm:$0xff] %vm759_vm0, %v1061_v63  ;;  %v1046_v1 = vpop.permute.xlu1 %1045  ;;  %1079 = vrot.lane.b32.xlu0 %v1061_v63, %s1790_s17 }
 0x3a6   : > { %v1064_v3 = vadd.f32 %v1046_v1, %v984_v0  ;;  %v1044_v4 = vpop.permute.xlu0 %1043 }
 0x3a7   : > { %v1063_v6 = vadd.f32 %v1044_v4, %v983_v2 }
 0x3a8   : > { %1112 = vst.msk [vmem:[%s2220_s13 + $0x28] sm:$0xff] %vm759_vm0, %v1064_v3  ;;  %1085 = vrot.lane.b32.xlu1 %v1064_v3, %s1790_s17 }
 0x3a9   : > { %1111 = vst.msk [vmem:[%s2220_s13 + $0x20] sm:$0xff] %vm759_vm0, %v1063_v6  ;;  %1083 = vrot.lane.b32.xlu0 %v1063_v6, %s1790_s17 }
 0x3aa   : > { %v1050_v26 = vpop.permute.xlu1 %1049 }
 0x3ab   : > { %v1066_v9 = vadd.f32 %v1050_v26, %v986_v7  ;;  %v1048_v10 = vpop.permute.xlu0 %1047 }
 0x3ac   : > { %v1065_v11 = vadd.f32 %v1048_v10, %v985_v8 }
 0x3ad   : > { %1114 = vst.msk [vmem:[%s2220_s13 + $0x38] sm:$0xff] %vm759_vm0, %v1066_v9  ;;  %1089 = vrot.lane.b32.xlu1 %v1066_v9, %s1790_s17 }
 0x3ae   : > { %1113 = vst.msk [vmem:[%s2220_s13 + $0x30] sm:$0xff] %vm759_vm0, %v1065_v11  ;;  %1087 = vrot.lane.b32.xlu0 %v1065_v11, %s1790_s17 }
 0x412   : > { %v1078_v12 = vpop.permute.xlu1 %1077 }
 0x413   : > { %v1100_v13 = vmul.f32 %v2175_v19, %v1078_v12  ;;  %v1076_v14 = vpop.permute.xlu0 %1075 }
 0x414   : > { %v1099_v15 = vmul.f32 %v2177_v28, %v1076_v14 }
 0x415   : > { %1125 = vrot.lane.b32.xlu1 %v1100_v13, %s1790_s17 }
 0x416   : > { %v1082_v16 = vpop.permute.xlu1 %1081  ;;  %1123 = vrot.lane.b32.xlu0 %v1099_v15, %s1790_s17 }
 0x417   : > { %v1102_v17 = vmul.f32 %v2182_v29, %v1082_v16  ;;  %v1080_v18 = vpop.permute.xlu0 %1079 }
 0x418   : > { %v1101_v31 = vmul.f32 %v2185_v33, %v1080_v18 }
 0x419   : > { %1129 = vrot.lane.b32.xlu1 %v1102_v17, %s1790_s17 }
 0x41a   : > { %v1086_v20 = vpop.permute.xlu1 %1085  ;;  %1127 = vrot.lane.b32.xlu0 %v1101_v31, %s1790_s17 }
 0x41b   : > { %v1104_v19 = vmul.f32 %v2190_v35, %v1086_v20  ;;  %v1084_v21 = vpop.permute.xlu0 %1083 }
 0x41c   : > { %v1103_v28 = vmul.f32 %v2193_v38, %v1084_v21 }
 0x41d   : > { %1133 = vrot.lane.b32.xlu1 %v1104_v19, %s1790_s17 }
 0x41e   : > { %1131 = vrot.lane.b32.xlu0 %v1103_v28, %s1790_s17 }
 0x41f   : > { %v1090_v22 = vpop.permute.xlu1 %1089 }
 0x420   : > { %v1106_v23 = vmul.f32 %v2199_v42, %v1090_v22  ;;  %v1088_v29 = vpop.permute.xlu0 %1087 }
 0x421   : > { %v1105_v30 = vmul.f32 %v2201_v44, %v1088_v29 }
 0x422   : > { %1137 = vrot.lane.b32.xlu1 %v1106_v23, %s1790_s17 }
 0x423   : > { %1135 = vrot.lane.b32.xlu0 %v1105_v30, %s1790_s17 }
 0x487   : > { %v1126_v33 = vpop.permute.xlu1 %1125 }
 0x488   : > { %1148 = vst.msk [vmem:[%s350_s21 + $0x8] sm:$0xff] %vm759_vm0, %v1126_v33  ;;  %v1124_v36 = vpop.permute.xlu0 %1123 }
 0x489   : > { %1147 = vst.msk [vmem:[%s350_s21] sm:$0xff] %vm759_vm0, %v1124_v36 }
 0x48b   : > { %v1130_v32 = vpop.permute.xlu1 %1129 }
 0x48c   : > { %1150 = vst.msk [vmem:[%s350_s21 + $0x18] sm:$0xff] %vm759_vm0, %v1130_v32  ;;  %v1128_v34 = vpop.permute.xlu0 %1127 }
 0x48d   : > { %1149 = vst.msk [vmem:[%s350_s21 + $0x10] sm:$0xff] %vm759_vm0, %v1128_v34 }
 0x48f   : > { %v1134_v35 = vpop.permute.xlu1 %1133 }
 0x490   : > { %1152 = vst.msk [vmem:[%s350_s21 + $0x28] sm:$0xff] %vm759_vm0, %v1134_v35  ;;  %v1132_v37 = vpop.permute.xlu0 %1131 }
 0x491   : > { %1151 = vst.msk [vmem:[%s350_s21 + $0x20] sm:$0xff] %vm759_vm0, %v1132_v37 }
 0x494   : > { %v1138_v38 = vpop.permute.xlu1 %1137 }
 0x495   : > { %1154 = vst.msk [vmem:[%s350_s21 + $0x38] sm:$0xff] %vm759_vm0, %v1138_v38  ;;  %v1136_v39 = vpop.permute.xlu0 %1135 }
 0x496   : > { %1153 = vst.msk [vmem:[%s350_s21 + $0x30] sm:$0xff] %vm759_vm0, %v1136_v39 }
 0x497 PF: > { %p18_p8 = scmp.ge.s32.totalorder %s1852_s29, 4   ;;  %s2311_s24 = smov %s1776_s25 }
 0x498   : > { %s2312_s25 = smov %s1780_s26  ;;  %s2313_s26 = smov %s1862_s9 }
 0x499   : > { %s2314_s27 = smov %s1852_s29  ;;  %20 = sbr.rel (!%p18_p8) target bundleno = 3 (0x3), region = 102 }
 0x4a0   :  { %1194 = vsyncpa [#allocation3], 1 }
 0x4a1   :  { %1196 = vsyncpa [#allocation3 + $0x1], 1 }

</bundles_post_ra>
